<compile_context>
chip_gen: v5e
topology: v5e:2x2
jax: 0.10.0
libtpu: 0.0.40
codegen_flags: <defaults>
</compile_context>

<pallas_src>
import jax
import jax.numpy as jnp
from jax import lax
from jax.experimental import pallas as pl
from jax.experimental.pallas import tpu as pltpu


def _round_up(x, m):
    return ((x + m - 1) // m) * m


def _predictor_kernel(x_ref, w_ref, mask_ref, o_ref):
    # x_ref: [tm, D], w_ref: [T, D] (resident), mask_ref: [tm, 1], o_ref: [tm, T]
    logits = lax.dot_general(
        x_ref[...],
        w_ref[...],
        dimension_numbers=(((1,), (1,)), ((), ())),  # contract on D, RHS kept as [T, D]
        preferred_element_type=jnp.float32,
    )
    # Single broadcasted mask multiply per tile (lane broadcast of the (tm, 1) column).
    o_ref[...] = (logits * mask_ref[...]).astype(o_ref.dtype)


def predictor_forward(data, weight, non_pad_mask, *, block_rows=512):
    """data: [B, S, D], weight: [T, D] (nn.Linear layout), non_pad_mask: [B, S, 1]."""
    B, S, D = data.shape
    T = weight.shape[0]
    M = B * S

    x2d = data.reshape(M, D)
    mask2d = non_pad_mask.reshape(M, 1).astype(data.dtype)

    # Row tile: multiple of 8 sublanes, capped by (rounded-up) M.
    tm = min(block_rows, _round_up(M, 8))
    Mp = _round_up(M, tm)
    if Mp != M:
        # Zero-pad ragged rows; padded rows produce zeros and are sliced off below.
        x2d = jnp.pad(x2d, ((0, Mp - M), (0, 0)))
        mask2d = jnp.pad(mask2d, ((0, Mp - M), (0, 0)))

    grid = (Mp // tm,)
    itemsize = jnp.dtype(data.dtype).itemsize

    out2d = pl.pallas_call(
        _predictor_kernel,
        out_shape=jax.ShapeDtypeStruct((Mp, T), data.dtype),
        grid=grid,
        in_specs=[
            pl.BlockSpec((tm, D), lambda i: (i, 0)),   # x tile, streamed over M
            pl.BlockSpec((T, D), lambda i: (0, 0)),    # weight, resident (tiny)
            pl.BlockSpec((tm, 1), lambda i: (i, 0)),   # mask tile
        ],
        out_specs=pl.BlockSpec((tm, T), lambda i: (i, 0)),
        compiler_params=pltpu.CompilerParams(
            dimension_semantics=("parallel",),          # megacore split on v7x
        ),
        cost_estimate=pl.CostEstimate(
            flops=2 * Mp * D * T,
            transcendentals=0,
            bytes_accessed=itemsize * (Mp * D + T * D + Mp + Mp * T),
        ),
    )(x2d, weight, mask2d)

    if Mp != M:
        out2d = out2d[:M]
    return out2d.reshape(B, S, T)


def xavier_normal(key, shape):
    # nn.init.xavier_normal_ for a [fan_out, fan_in] weight
    fan_out, fan_in = shape
    std = (2.0 / (fan_in + fan_out)) ** 0.5
    return std * jax.random.normal(key, shape, dtype=jnp.float32)


def _run_case(key, B, S, D, T):
    k_data, k_w, k_mask = jax.random.split(key, 3)
    data = jax.random.normal(k_data, (B, S, D), dtype=jnp.float32)
    weight = xavier_normal(k_w, (T, D))  # nn.Linear(dim, num_types, bias=False).weight
    non_pad_mask = (jax.random.uniform(k_mask, (B, S, 1)) > 0.25).astype(jnp.float32)

    out = jax.block_until_ready(predictor_forward(data, weight, non_pad_mask))

    ref = (data @ weight.T) * non_pad_mask
    assert out.shape == (B, S, T)
    assert jnp.allclose(out, ref, atol=1e-5, rtol=1e-5)


if __name__ == "__main__":
    key = jax.random.PRNGKey(0)
    k1, k2, k3 = jax.random.split(key, 3)

    # Small shape from the module spec (single-tile path): B=2, S=8, D=32, T=16.
    _run_case(k1, B=2, S=8, D=32, T=16)
    # Multi-tile path: M = 2048 -> grid of 4 row tiles, exercises pipelining.
    _run_case(k2, B=4, S=512, D=32, T=16)
    # Ragged M (900 rows, not a multiple of 512) exercises the pad/slice path.
    _run_case(k3, B=3, S=300, D=32, T=16)

    print("KERNEL_OK")
</pallas_src>

<mosaic_0001>
module attributes {stable_mosaic.version = 11 : i64} {
  func.func @_predictor_kernel(%arg0: i32, %arg1: memref<16x32xf32, #tpu.memory_space<vmem>>, %arg2: memref<16x32xf32, #tpu.memory_space<vmem>>, %arg3: memref<16x1xf32, #tpu.memory_space<vmem>>, %arg4: memref<16x16xf32, #tpu.memory_space<vmem>>) attributes {dimension_semantics = [#tpu.dimension_semantics<parallel>], iteration_bounds = array<i64: 1>, scalar_prefetch = 0 : i64, scratch_operands = 0 : i64, tpu.core_type = #tpu.core_type<tc>, window_params = [{transform_indices = @transform_0, window_bounds = array<i64: 16, 32>}, {pipeline_mode = #tpu.pipeline_mode<synchronous>, transform_indices = @transform_1, window_bounds = array<i64: 16, 32>}, {transform_indices = @transform_2, window_bounds = array<i64: 16, 1>}, {transform_indices = @transform_3, window_bounds = array<i64: 16, 16>}]} {
    %c0 = arith.constant 0 : index
    %c0_0 = arith.constant 0 : index
    %0 = vector.load %arg1[%c0, %c0_0] : memref<16x32xf32, #tpu.memory_space<vmem>>, vector<16x32xf32>
    %c0_1 = arith.constant 0 : index
    %c0_2 = arith.constant 0 : index
    %1 = vector.load %arg2[%c0_1, %c0_2] : memref<16x32xf32, #tpu.memory_space<vmem>>, vector<16x32xf32>
    %cst = arith.constant dense<0.000000e+00> : vector<16x16xf32>
    %2 = tpu.matmul %0, %1, %cst {dimension_numbers = #tpu.dot_dimension_numbers<[1], [1], [0], [0], [0, 0, 1, 0], [], []>} : vector<16x32xf32>, vector<16x32xf32>, vector<16x16xf32> -> vector<16x16xf32>
    %c0_3 = arith.constant 0 : index
    %c0_4 = arith.constant 0 : index
    %3 = vector.load %arg3[%c0_3, %c0_4] : memref<16x1xf32, #tpu.memory_space<vmem>>, vector<16x1xf32>
    %4 = vector.broadcast %3 : vector<16x1xf32> to vector<16x16xf32>
    %5 = arith.mulf %2, %4 : vector<16x16xf32>
    %c0_5 = arith.constant 0 : index
    %c0_6 = arith.constant 0 : index
    %6 = vector.load %arg4[%c0_5, %c0_6] : memref<16x16xf32, #tpu.memory_space<vmem>>, vector<16x16xf32>
    tpu.vector_store %arg4[%c0_5, %c0_6], %5 {strides = array<i32>} : memref<16x16xf32, #tpu.memory_space<vmem>>, vector<16x16xf32>,
    return
  }
  func.func @transform_0(%arg0: i32) -> (i32, i32) {
    %c0_i32 = arith.constant 0 : i32
    %c0_i32_0 = arith.constant 0 : i32
    return %arg0, %c0_i32 : i32, i32
  }
  func.func @transform_1(%arg0: i32) -> (i32, i32) {
    %c0_i32 = arith.constant 0 : i32
    %c0_i32_0 = arith.constant 0 : i32
    %c0_i32_1 = arith.constant 0 : i32
    return %c0_i32, %c0_i32_0 : i32, i32
  }
  func.func @transform_2(%arg0: i32) -> (i32, i32) {
    %c0_i32 = arith.constant 0 : i32
    %c0_i32_0 = arith.constant 0 : i32
    return %arg0, %c0_i32 : i32, i32
  }
  func.func @transform_3(%arg0: i32) -> (i32, i32) {
    %c0_i32 = arith.constant 0 : i32
    %c0_i32_0 = arith.constant 0 : i32
    return %arg0, %c0_i32 : i32, i32
  }
}

</mosaic_0001>

<bundles_post_ra>
// kernel: tpu_custom_call.1
= control target key start
LH: loop header
LB: loop body
LE: loop exit
PB: predicated region body
PF: predicated region fallthrough
CT: control target
= control target key end

     0   :  { %8 = vsyncpa [#allocation3], 0  ;;  %s220_s0 = inlined_call_operand.vmem [shape: f32[16,32], index: 0, kind: input, shape index: {}]   ;;  %s221_s1 = inlined_call_operand.hbm [shape: f32[16,32], index: 1, kind: input, shape index: {}]   ;;  %s222_s2 = inlined_call_operand.vmem [shape: f32[16,1], index: 2, kind: input, shape index: {}]   ;;  %s223_s3 = inlined_call_operand.hbm [shape: f32[16,16], index: 3, kind: output, shape index: {}]  }
   0x1   :  { %9 = vsyncpa [#allocation4], 0  ;;  %s16_s14 = sshll.u32 %s221_s1, 4  ;;  %s171_s15 = smov [#allocation2]   ;;  %s17_s14 = int_to_ptr.hbm [resolvable:$true] %s16_s14 }
   0x2   :  { %s18_s16 = sshll.u32 %s171_s15, 4  ;;  %s172_s17 = smov 128   ;;  %s19_s16 = int_to_ptr.vmem [resolvable:$true] %s18_s16 }
   0x3   :  { %s173_s18 = smov 8  }
   0x4   :  { %24 = dma.hbm_to_vmem [thread:$0]  %s17_s14, 256, %s19_s16, [#allocation3], %s172_s17, %s172_s17, %s173_s18  }
   0x5   :  { %167 = dma.done.wait [#allocation3], 256  }
   0x6   :  { %168 = vsyncadd [#allocation3], 4294967040  ;;  %v174_v0 = vmov 0   ;;  %vm35_vm0 = vcmask 261120   ;;  %v34_v1 = vld [vmem:[#allocation2 + $0x8] sm:$0xff]  ;;  %v71_v2 = vld [vmem:[%s222_s2] sm:$0xff] }
   0x7   :  { %118 = vset.pattern.permute.xlu0 %v174_v0  ;;  %107 = vmatpush.xpose.msk.msra.mxu0 %vm35_vm0, %v34_v1  ;;  %v33_v3 = vld [vmem:[#allocation2] sm:$0xff]  ;;  %v32_v5 = vld [vmem:[%s220_s0 + $0x8] sm:$0xff]  ;;  %s175_s26 = smov [#allocation5]   ;;  %s94_s30 = sshll.u32 %s223_s3, 4  ;;  %vm85_vm1 = vcmask 130048   ;;  %s95_s30 = int_to_ptr.hbm [resolvable:$true] %s94_s30 }
   0x8   :  { %111 = vmatpush.xpose.msk.msra.mxu1 %vm35_vm0, %v34_v1  ;;  %75 = vperm.xlu0 %118, %v71_v2   ;;  %v31_v4 = vld [vmem:[%s220_s0] sm:$0xff]  ;;  %v72_v6 = vld [vmem:[%s222_s2 + $0x8] sm:$0xff]  ;;  %s92_s27 = sshll.u32 %s175_s26, 4  ;;  %s93_s27 = int_to_ptr.vmem [resolvable:$true] %s92_s27 }
   0xb   :  { %108 = vmatpush.xpose.msk.msra.mxu0 %vm35_vm0, %v33_v3 }
   0xc   :  { %112 = vmatpush.xpose.msk.msra.mxu1 %vm35_vm0, %v33_v3 }
   0xe   :  { %109 = vmatmul.msk.f32.vlgmr.msra.gmra.mxu0 %vm35_vm0, %v31_v4 }
   0xf   :  { %110 = vmatmul.msk.f32.vlgmr.msra.gmra.mxu1 %vm35_vm0, %v32_v5 }
  0x10   :  { %80 = vperm.xlu0 %118, %v72_v6  }
  0x7a   :  { %v76_v7 = vpop.permute.xlu0 %75 }
  0x82   :  { %v81_v8 = vpop.permute.xlu0 %80 }
  0x8b   :  { %v65_v9 = vpop.f32.mrf.mxu0 }
  0x8c   :  { %v68_v10 = vpop.f32.mrf.mxu1  ;;  %v83_v11 = vmul.f32 %v76_v7, %v65_v9 }
  0x8d   :  { %v84_v12 = vmul.f32 %v81_v8, %v68_v10 }
  0x8e   :  { %86 = vst.msk [vmem:[#allocation5] sm:$0xff] %vm85_vm1, %v83_v11 }
  0x8f   :  { %87 = vst.msk [vmem:[#allocation5 + $0x8] sm:$0xff] %vm85_vm1, %v84_v12 }
  0x90   :  { %100 = dma.vmem_to_hbm [thread:$0]  %s93_s27, 256, %s95_s30, [#allocation4], %s172_s17, %s172_s17, %s173_s18  }
  0x91   :  { %169 = dma.done.wait [#allocation4], 256  }
  0x92   :  { %170 = vsyncadd [#allocation4], 4294967040 }
  0x93   :  { %105 = vsyncpa [#allocation3], 1 }
  0x94   :  { %106 = vsyncpa [#allocation4], 1 }

</bundles_post_ra>
